<compile_context>
chip_gen: v5e
topology: v5e:2x2
jax: 0.10.0
libtpu: 0.0.40
codegen_flags: <defaults>
</compile_context>

<pallas_src>
import math
from functools import lru_cache

import jax
import jax.numpy as jnp
import numpy as np
from jax.experimental import pallas as pl
from jax.experimental.pallas import tpu as pltpu


# --------------------------------------------------------------------------
# Host-side construction of exact separable bilinear matrices
# --------------------------------------------------------------------------
def _bilinear_resize_matrix(in_size: int, out_size: int, scale_factor: float) -> np.ndarray:
    """(out_size, in_size) matrix reproducing F.interpolate(mode='bilinear',
    align_corners=False, scale_factor=...) along one axis
    (torch>=1.11, recompute_scale_factor=False semantics)."""
    s = 1.0 / scale_factor
    A = np.zeros((out_size, in_size), dtype=np.float64)
    for d in range(out_size):
        src = (d + 0.5) * s - 0.5
        src = max(src, 0.0)
        i0 = min(int(math.floor(src)), in_size - 1)
        i1 = min(i0 + 1, in_size - 1)
        w1 = src - i0
        A[d, i0] += 1.0 - w1
        A[d, i1] += w1
    return A


@lru_cache(maxsize=None)
def _composed_resize_matrix(in_size: int, multiplier: float, n_stages: int):
    """Compose the n_stages per-stage matrices into one (out, in) matrix so all
    resize stages become a single pass over HBM. Returns (matrix_f32, out_size)."""
    A = np.eye(in_size, dtype=np.float64)
    s = in_size
    for _ in range(n_stages):
        so = int(math.floor(s * multiplier))
        A = _bilinear_resize_matrix(s, so, multiplier) @ A
        s = so
    return np.asarray(A, dtype=np.float32), s


# --------------------------------------------------------------------------
# VMEM budgeting (generation aware: v5e/v6e have 128 MiB, v7x only 64 MiB)
# --------------------------------------------------------------------------
def _tpu_vmem_limit() -> int:
    try:
        cap = int(pltpu.get_tpu_info().vmem_capacity_bytes)
    except Exception:
        cap = 128 * 1024 * 1024
    # ~48 MiB scoped on 128 MiB parts, ~32 MiB on 64 MiB (v7x) parts.
    return int(min(48 * 1024 * 1024, cap // 2))


def _pick_channel_block(C, H, W, Ho, Wo, x_itemsize, mat_itemsize, vmem_limit):
    """Largest divisor of C whose blocks + intermediates fit the VMEM budget."""
    # Interp matrices are VMEM-resident (constant index_map); count 2 buffers each.
    fixed = (W * Wo + H * Ho) * mat_itemsize * 2
    budget = max(vmem_limit - fixed, 1 << 20) // 2     # leave headroom for the compiler
    # Per-channel cost: double-buffered in/out blocks + f32 matmul intermediates
    # (first-dot output, its transposed copy, second-dot output, final relayout).
    per_c = 2 * (H * W + Ho * Wo) * x_itemsize \
        + (H * Wo + Wo * H + Wo * Ho + Ho * Wo) * 4
    cap = max(1, min(C, budget // max(per_c, 1)))
    for cb in range(int(cap), 0, -1):
        if C % cb == 0:
            return cb
    return 1


# --------------------------------------------------------------------------
# Pallas kernels
# --------------------------------------------------------------------------
def _resize_kernel(awt_ref, aht_ref, x_ref, o_ref):
    # awt: (W, Wo) = Aw^T; aht: (H, Ho) = Ah^T
    # x block: (1, cb, H, W); out block: (1, cb, Ho, Wo)
    _, cb, H, W = x_ref.shape
    Wo = awt_ref.shape[1]
    Ho = aht_ref.shape[1]
    # One fat-M MXU dot over the W axis for ALL channels in the block.
    x2 = x_ref[0].reshape(cb * H, W)
    t = jnp.dot(x2, awt_ref[...], preferred_element_type=jnp.float32)        # (cb*H, Wo)
    # Minor transpose (XLU) to expose H as the contraction axis, then one
    # fat-M dot over H.  bf16 path keeps the MXU at native rate.
    t = jnp.transpose(t.reshape(cb, H, Wo), (0, 2, 1)).reshape(cb * Wo, H)
    t = t.astype(awt_ref.dtype)
    r = jnp.dot(t, aht_ref[...], preferred_element_type=jnp.float32)         # (cb*Wo, Ho)
    r = jnp.transpose(r.reshape(cb, Wo, Ho), (0, 2, 1))                      # (cb, Ho, Wo)
    o_ref[0] = r.astype(o_ref.dtype)


def _fused_resize_remap_kernel(w_ref, b_ref, awt_ref, aht_ref, x_ref, o_ref):
    # w: SMEM (Co*Ci,) f32; b: SMEM (Co,) f32; awt: (W, Wo); aht: (H, Ho)
    # x block: (1, Ci, H, W); out block: (1, Co, Ho, Wo)
    _, ci, H, W = x_ref.shape
    co = o_ref.shape[1]
    Wo = awt_ref.shape[1]
    Ho = aht_ref.shape[1]
    # 1) merged resize of all input channels (two fat-M MXU dots), kept in VMEM.
    x2 = x_ref[0].reshape(ci * H, W)
    t = jnp.dot(x2, awt_ref[...], preferred_element_type=jnp.float32)        # (ci*H, Wo)
    t = jnp.transpose(t.reshape(ci, H, Wo), (0, 2, 1)).reshape(ci * Wo, H)
    t = t.astype(awt_ref.dtype)
    r = jnp.dot(t, aht_ref[...], preferred_element_type=jnp.float32)         # (ci*Wo, Ho)
    res = jnp.transpose(r.reshape(ci, Wo, Ho), (0, 2, 1))                    # (ci, Ho, Wo) f32
    # 2) 1x1 conv fused in: Co*Ci is tiny for this module, so unrolled
    #    scalar*plane FMAs on the VPU with SMEM weights (no MXU padding,
    #    no HBM round trip).
    # TODO(synk): switch to a single MXU dot W(Co,Ci) @ res(Ci, Ho*Wo) when Co*Ci grows large.
    for d in range(co):
        acc = w_ref[d * ci] * res[0]
        for c in range(1, ci):
            acc = acc + w_ref[d * ci + c] * res[c]
        acc = acc + b_ref[d]
        o_ref[0, d] = acc.astype(o_ref.dtype)


def _channel_map_kernel(w_ref, b_ref, x_ref, o_ref):
    # n_stages == 0 remap path: pure 1x1 channel mix, no resize matmuls.
    _, ci, _, _ = x_ref.shape
    co = o_ref.shape[1]
    xv = x_ref[0].astype(jnp.float32)
    for d in range(co):
        acc = w_ref[d * ci] * xv[0]
        for c in range(1, ci):
            acc = acc + w_ref[d * ci + c] * xv[c]
        o_ref[0, d] = (acc + b_ref[d]).astype(o_ref.dtype)


# --------------------------------------------------------------------------
# Wrappers
# --------------------------------------------------------------------------
def _interp_matrices(H, W, multiplier, n_stages, mat_dtype):
    ah_np, Ho = _composed_resize_matrix(H, float(multiplier), n_stages)
    aw_np, Wo = _composed_resize_matrix(W, float(multiplier), n_stages)
    awt = jnp.asarray(aw_np.T, dtype=mat_dtype)   # (W, Wo)
    aht = jnp.asarray(ah_np.T, dtype=mat_dtype)   # (H, Ho)
    return awt, aht, Ho, Wo


def bilinear_resize(x: jax.Array, multiplier: float, n_stages: int) -> jax.Array:
    """All n_stages bilinear downscales as one kernel (composed matrices)."""
    B, C, H, W = x.shape
    mat_dtype = jnp.bfloat16 if x.dtype == jnp.bfloat16 else jnp.float32
    awt, aht, Ho, Wo = _interp_matrices(H, W, multiplier, n_stages, mat_dtype)
    vmem_limit = _tpu_vmem_limit()
    cb = _pick_channel_block(C, H, W, Ho, Wo, x.dtype.itemsize,
                             jnp.dtype(mat_dtype).itemsize, vmem_limit)
    # TODO(synk): very large spatial planes (block > VMEM even at cb=1) would need
    # spatial tiling of H/W; not implemented.
    # TODO(synk): pick W-first vs H-first contraction per aspect ratio for non-square inputs.
    return pl.pallas_call(
        _resize_kernel,
        out_shape=jax.ShapeDtypeStruct((B, C, Ho, Wo), x.dtype),
        grid=(B, C // cb),
        in_specs=[
            pl.BlockSpec((W, Wo), lambda b, c: (0, 0)),
            pl.BlockSpec((H, Ho), lambda b, c: (0, 0)),
            pl.BlockSpec((1, cb, H, W), lambda b, c: (b, c, 0, 0)),
        ],
        out_specs=pl.BlockSpec((1, cb, Ho, Wo), lambda b, c: (b, c, 0, 0)),
        compiler_params=pltpu.CompilerParams(
            dimension_semantics=("parallel", "parallel"),
            vmem_limit_bytes=vmem_limit),
    )(awt, aht, x)


def fused_resize_channel_map(x: jax.Array, multiplier: float, n_stages: int,
                             weight: jax.Array, bias=None) -> jax.Array:
    """Composed n-stage bilinear resize + 1x1 Conv2d channel remap in one kernel."""
    B, Ci, H, W = x.shape
    Co = weight.shape[0]
    w_flat = weight.reshape(Co * Ci).astype(jnp.float32)
    b_vec = (bias if bias is not None
             else jnp.zeros((Co,), jnp.float32)).astype(jnp.float32)
    vmem_limit = _tpu_vmem_limit()

    if n_stages == 0:
        # Identity resize -> skip the matmuls entirely, pure channel mix.
        return pl.pallas_call(
            _channel_map_kernel,
            out_shape=jax.ShapeDtypeStruct((B, Co, H, W), x.dtype),
            grid=(B,),
            in_specs=[
                pl.BlockSpec(memory_space=pltpu.MemorySpace.SMEM),
                pl.BlockSpec(memory_space=pltpu.MemorySpace.SMEM),
                pl.BlockSpec((1, Ci, H, W), lambda b: (b, 0, 0, 0)),
            ],
            out_specs=pl.BlockSpec((1, Co, H, W), lambda b: (b, 0, 0, 0)),
            compiler_params=pltpu.CompilerParams(
                dimension_semantics=("parallel",),
                vmem_limit_bytes=vmem_limit),
        )(w_flat, b_vec, x)

    mat_dtype = jnp.bfloat16 if x.dtype == jnp.bfloat16 else jnp.float32
    awt, aht, Ho, Wo = _interp_matrices(H, W, multiplier, n_stages, mat_dtype)
    # TODO(synk): add an Ho-tile grid axis (image kept VMEM-resident) for very large
    # images / v7x dual-TC sharding at batch 1-2; grid=(B,) is enough at these sizes.
    return pl.pallas_call(
        _fused_resize_remap_kernel,
        out_shape=jax.ShapeDtypeStruct((B, Co, Ho, Wo), x.dtype),
        grid=(B,),
        in_specs=[
            pl.BlockSpec(memory_space=pltpu.MemorySpace.SMEM),   # conv weight (flat)
            pl.BlockSpec(memory_space=pltpu.MemorySpace.SMEM),   # conv bias
            pl.BlockSpec((W, Wo), lambda b: (0, 0)),
            pl.BlockSpec((H, Ho), lambda b: (0, 0)),
            pl.BlockSpec((1, Ci, H, W), lambda b: (b, 0, 0, 0)),
        ],
        out_specs=pl.BlockSpec((1, Co, Ho, Wo), lambda b: (b, 0, 0, 0)),
        compiler_params=pltpu.CompilerParams(
            dimension_semantics=("parallel",),
            vmem_limit_bytes=vmem_limit),
    )(w_flat, b_vec, awt, aht, x)


class SpatialRescalerPallas:
    # TODO(synk): only method='bilinear' and a kernel_size=1 channel mapper are
    # implemented in Pallas; other interp modes / k>1 convs are omitted.
    def __init__(self, n_stages=1, method="bilinear", multiplier=0.5,
                 in_channels=3, out_channels=None, bias=False,
                 wrap_video=False, kernel_size=1, remap_output=False, *, key=None):
        assert n_stages >= 0
        assert method == "bilinear"
        self.n_stages = n_stages
        self.multiplier = multiplier
        self.wrap_video = wrap_video
        self.remap_output = (out_channels is not None) or remap_output
        self.weight = None
        self.bias = None
        if self.remap_output:
            assert out_channels is not None
            assert kernel_size == 1
            fan_in = in_channels * kernel_size * kernel_size
            bound = 1.0 / math.sqrt(fan_in)   # Conv2d default (kaiming-uniform) bound
            kw, kb = jax.random.split(key)
            self.weight = jax.random.uniform(kw, (out_channels, in_channels),
                                             jnp.float32, -bound, bound)
            if bias:
                self.bias = jax.random.uniform(kb, (out_channels,),
                                               jnp.float32, -bound, bound)

    def __call__(self, x: jax.Array) -> jax.Array:
        wrapped = self.wrap_video and x.ndim == 5
        if wrapped:
            B, C, T, H, W = x.shape
            x = jnp.transpose(x, (0, 2, 1, 3, 4)).reshape(B * T, C, H, W)
        if self.remap_output:
            # resize (all stages composed) + 1x1 conv fused: one HBM pass total.
            # (1x1 conv commutes with the video (b t) batch folding.)
            x = fused_resize_channel_map(x, self.multiplier, self.n_stages,
                                         self.weight, self.bias)
        elif self.n_stages > 0:
            x = bilinear_resize(x, self.multiplier, self.n_stages)
        if wrapped:
            _, c, h, w = x.shape
            x = jnp.transpose(x.reshape(B, T, c, h, w), (0, 2, 1, 3, 4))
        return x

    def encode(self, x):
        return self(x)


if __name__ == "__main__":
    key = jax.random.PRNGKey(0)
    kx, kw = jax.random.split(key)
    x = jax.random.normal(kx, (2, 4, 16, 16), jnp.float32)
    x64 = np.asarray(x, dtype=np.float64)
    a1 = _bilinear_resize_matrix(16, 8, 0.5)    # 16 -> 8
    a2 = _bilinear_resize_matrix(8, 4, 0.5)     # 8  -> 4

    # --- test 1: one stage + fused 1x1 channel remap -----------------------
    mod = SpatialRescalerPallas(n_stages=1, method="bilinear", multiplier=0.5,
                                in_channels=4, out_channels=8, bias=False,
                                kernel_size=1, key=kw)
    out = jax.block_until_ready(mod(x))
    assert out.shape == (2, 8, 8, 8), out.shape
    r1 = np.einsum("oh,bchw,pw->bcop", a1, x64, a1)
    ref = np.einsum("dc,bchw->bdhw", np.asarray(mod.weight, np.float64), r1)
    np.testing.assert_allclose(np.asarray(out, np.float64), ref, atol=1e-4, rtol=1e-4)

    # --- test 2: two composed stages, no remap -----------------------------
    mod2 = SpatialRescalerPallas(n_stages=2, method="bilinear", multiplier=0.5,
                                 in_channels=4, key=kw)
    out2 = jax.block_until_ready(mod2(x))
    assert out2.shape == (2, 4, 4, 4), out2.shape
    ref2 = np.einsum("oh,bchw,pw->bcop", a2, r1, a2)
    np.testing.assert_allclose(np.asarray(out2, np.float64), ref2, atol=1e-4, rtol=1e-4)

    # --- test 3: n_stages=0 + remap (channel mix only, with bias) ----------
    mod3 = SpatialRescalerPallas(n_stages=0, method="bilinear", multiplier=0.5,
                                 in_channels=4, out_channels=5, bias=True,
                                 kernel_size=1, key=kw)
    out3 = jax.block_until_ready(mod3(x))
    assert out3.shape == (2, 5, 16, 16), out3.shape
    ref3 = (np.einsum("dc,bchw->bdhw", np.asarray(mod3.weight, np.float64), x64)
            + np.asarray(mod3.bias, np.float64)[None, :, None, None])
    np.testing.assert_allclose(np.asarray(out3, np.float64), ref3, atol=1e-4, rtol=1e-4)

    print("KERNEL_OK")
</pallas_src>

<mosaic_0001>
module attributes {stable_mosaic.version = 11 : i64} {
  func.func @_fused_resize_remap_kernel(%arg0: i32, %arg1: memref<32xf32, #tpu.memory_space<smem>>, %arg2: memref<8xf32, #tpu.memory_space<smem>>, %arg3: memref<16x8xf32, #tpu.memory_space<vmem>>, %arg4: memref<16x8xf32, #tpu.memory_space<vmem>>, %arg5: memref<1x4x16x16xf32, #tpu.memory_space<vmem>>, %arg6: memref<1x8x8x8xf32, #tpu.memory_space<vmem>>) attributes {dimension_semantics = [#tpu.dimension_semantics<parallel>], iteration_bounds = array<i64: 2>, scalar_prefetch = 0 : i64, scratch_operands = 0 : i64, tpu.core_type = #tpu.core_type<tc>, window_params = [{transform_indices = @transform_0, window_bounds = array<i64: 32>}, {transform_indices = @transform_1, window_bounds = array<i64: 8>}, {pipeline_mode = #tpu.pipeline_mode<synchronous>, transform_indices = @transform_2, window_bounds = array<i64: 16, 8>}, {pipeline_mode = #tpu.pipeline_mode<synchronous>, transform_indices = @transform_3, window_bounds = array<i64: 16, 8>}, {transform_indices = @transform_4, window_bounds = array<i64: 1, 4, 16, 16>}, {transform_indices = @transform_5, window_bounds = array<i64: 1, 8, 8, 8>}]} {
    %c0 = arith.constant 0 : index
    %c0_0 = arith.constant 0 : index
    %c0_1 = arith.constant 0 : index
    %c0_2 = arith.constant 0 : index
    %0 = vector.load %arg5[%c0, %c0_0, %c0_1, %c0_2] : memref<1x4x16x16xf32, #tpu.memory_space<vmem>>, vector<1x4x16x16xf32>
    %1 = vector.shape_cast %0 : vector<1x4x16x16xf32> to vector<4x16x16xf32>
    %2 = vector.shape_cast %1 : vector<4x16x16xf32> to vector<64x16xf32>
    %c0_3 = arith.constant 0 : index
    %c0_4 = arith.constant 0 : index
    %3 = vector.load %arg3[%c0_3, %c0_4] : memref<16x8xf32, #tpu.memory_space<vmem>>, vector<16x8xf32>
    %cst = arith.constant dense<0.000000e+00> : vector<64x8xf32>
    %4 = tpu.matmul %2, %3, %cst {dimension_numbers = #tpu.dot_dimension_numbers<[1], [0], [0], [1], [0, 0, 1, 1], [], []>} : vector<64x16xf32>, vector<16x8xf32>, vector<64x8xf32> -> vector<64x8xf32>
    %5 = vector.shape_cast %4 : vector<64x8xf32> to vector<4x16x8xf32>
    %6 = tpu.transpose %5, [0, 2, 1] : vector<4x16x8xf32> -> vector<4x8x16xf32>
    %7 = vector.shape_cast %6 : vector<4x8x16xf32> to vector<32x16xf32>
    %c0_5 = arith.constant 0 : index
    %c0_6 = arith.constant 0 : index
    %8 = vector.load %arg4[%c0_5, %c0_6] : memref<16x8xf32, #tpu.memory_space<vmem>>, vector<16x8xf32>
    %cst_7 = arith.constant dense<0.000000e+00> : vector<32x8xf32>
    %9 = tpu.matmul %7, %8, %cst_7 {dimension_numbers = #tpu.dot_dimension_numbers<[1], [0], [0], [1], [0, 0, 1, 1], [], []>} : vector<32x16xf32>, vector<16x8xf32>, vector<32x8xf32> -> vector<32x8xf32>
    %10 = vector.shape_cast %9 : vector<32x8xf32> to vector<4x8x8xf32>
    %11 = tpu.transpose %10, [0, 2, 1] : vector<4x8x8xf32> -> vector<4x8x8xf32>
    %c0_8 = arith.constant 0 : index
    %12 = memref.load %arg1[%c0_8] : memref<32xf32, #tpu.memory_space<smem>>
    %13 = vector.extract_strided_slice %11 {offsets = [0, 0, 0], sizes = [1, 8, 8], strides = [1, 1, 1]} : vector<4x8x8xf32> to vector<1x8x8xf32>
    %14 = vector.shape_cast %13 : vector<1x8x8xf32> to vector<8x8xf32>
    %15 = vector.broadcast %12 : f32 to vector<8x8xf32>
    %16 = arith.mulf %15, %14 : vector<8x8xf32>
    %c1 = arith.constant 1 : index
    %17 = memref.load %arg1[%c1] : memref<32xf32, #tpu.memory_space<smem>>
    %18 = vector.extract_strided_slice %11 {offsets = [1, 0, 0], sizes = [1, 8, 8], strides = [1, 1, 1]} : vector<4x8x8xf32> to vector<1x8x8xf32>
    %19 = vector.shape_cast %18 : vector<1x8x8xf32> to vector<8x8xf32>
    %20 = vector.broadcast %17 : f32 to vector<8x8xf32>
    %21 = arith.mulf %20, %19 : vector<8x8xf32>
    %22 = arith.addf %16, %21 : vector<8x8xf32>
    %c2 = arith.constant 2 : index
    %23 = memref.load %arg1[%c2] : memref<32xf32, #tpu.memory_space<smem>>
    %24 = vector.extract_strided_slice %11 {offsets = [2, 0, 0], sizes = [1, 8, 8], strides = [1, 1, 1]} : vector<4x8x8xf32> to vector<1x8x8xf32>
    %25 = vector.shape_cast %24 : vector<1x8x8xf32> to vector<8x8xf32>
    %26 = vector.broadcast %23 : f32 to vector<8x8xf32>
    %27 = arith.mulf %26, %25 : vector<8x8xf32>
    %28 = arith.addf %22, %27 : vector<8x8xf32>
    %c3 = arith.constant 3 : index
    %29 = memref.load %arg1[%c3] : memref<32xf32, #tpu.memory_space<smem>>
    %30 = vector.extract_strided_slice %11 {offsets = [3, 0, 0], sizes = [1, 8, 8], strides = [1, 1, 1]} : vector<4x8x8xf32> to vector<1x8x8xf32>
    %31 = vector.shape_cast %30 : vector<1x8x8xf32> to vector<8x8xf32>
    %32 = vector.broadcast %29 : f32 to vector<8x8xf32>
    %33 = arith.mulf %32, %31 : vector<8x8xf32>
    %34 = arith.addf %28, %33 : vector<8x8xf32>
    %c0_9 = arith.constant 0 : index
    %35 = memref.load %arg2[%c0_9] : memref<8xf32, #tpu.memory_space<smem>>
    %36 = vector.broadcast %35 : f32 to vector<8x8xf32>
    %37 = arith.addf %34, %36 : vector<8x8xf32>
    %c0_10 = arith.constant 0 : index
    %c0_11 = arith.constant 0 : index
    %c0_12 = arith.constant 0 : index
    %c0_13 = arith.constant 0 : index
    %38 = vector.load %arg6[%c0_10, %c0_11, %c0_12, %c0_13] : memref<1x8x8x8xf32, #tpu.memory_space<vmem>>, vector<1x1x8x8xf32>
    %39 = vector.shape_cast %38 : vector<1x1x8x8xf32> to vector<8x8xf32>
    %40 = vector.shape_cast %37 : vector<8x8xf32> to vector<1x1x8x8xf32>
    tpu.vector_store %arg6[%c0_10, %c0_11, %c0_12, %c0_13], %40 {strides = array<i32>} : memref<1x8x8x8xf32, #tpu.memory_space<vmem>>, vector<1x1x8x8xf32>,
    %c4 = arith.constant 4 : index
    %41 = memref.load %arg1[%c4] : memref<32xf32, #tpu.memory_space<smem>>
    %42 = vector.extract_strided_slice %11 {offsets = [0, 0, 0], sizes = [1, 8, 8], strides = [1, 1, 1]} : vector<4x8x8xf32> to vector<1x8x8xf32>
    %43 = vector.shape_cast %42 : vector<1x8x8xf32> to vector<8x8xf32>
    %44 = vector.broadcast %41 : f32 to vector<8x8xf32>
    %45 = arith.mulf %44, %43 : vector<8x8xf32>
    %c5 = arith.constant 5 : index
    %46 = memref.load %arg1[%c5] : memref<32xf32, #tpu.memory_space<smem>>
    %47 = vector.extract_strided_slice %11 {offsets = [1, 0, 0], sizes = [1, 8, 8], strides = [1, 1, 1]} : vector<4x8x8xf32> to vector<1x8x8xf32>
    %48 = vector.shape_cast %47 : vector<1x8x8xf32> to vector<8x8xf32>
    %49 = vector.broadcast %46 : f32 to vector<8x8xf32>
    %50 = arith.mulf %49, %48 : vector<8x8xf32>
    %51 = arith.addf %45, %50 : vector<8x8xf32>
    %c6 = arith.constant 6 : index
    %52 = memref.load %arg1[%c6] : memref<32xf32, #tpu.memory_space<smem>>
    %53 = vector.extract_strided_slice %11 {offsets = [2, 0, 0], sizes = [1, 8, 8], strides = [1, 1, 1]} : vector<4x8x8xf32> to vector<1x8x8xf32>
    %54 = vector.shape_cast %53 : vector<1x8x8xf32> to vector<8x8xf32>
    %55 = vector.broadcast %52 : f32 to vector<8x8xf32>
    %56 = arith.mulf %55, %54 : vector<8x8xf32>
    %57 = arith.addf %51, %56 : vector<8x8xf32>
    %c7 = arith.constant 7 : index
    %58 = memref.load %arg1[%c7] : memref<32xf32, #tpu.memory_space<smem>>
    %59 = vector.extract_strided_slice %11 {offsets = [3, 0, 0], sizes = [1, 8, 8], strides = [1, 1, 1]} : vector<4x8x8xf32> to vector<1x8x8xf32>
    %60 = vector.shape_cast %59 : vector<1x8x8xf32> to vector<8x8xf32>
    %61 = vector.broadcast %58 : f32 to vector<8x8xf32>
    %62 = arith.mulf %61, %60 : vector<8x8xf32>
    %63 = arith.addf %57, %62 : vector<8x8xf32>
    %c1_14 = arith.constant 1 : index
    %64 = memref.load %arg2[%c1_14] : memref<8xf32, #tpu.memory_space<smem>>
    %65 = vector.broadcast %64 : f32 to vector<8x8xf32>
    %66 = arith.addf %63, %65 : vector<8x8xf32>
    %c0_15 = arith.constant 0 : index
    %c1_16 = arith.constant 1 : index
    %c0_17 = arith.constant 0 : index
    %c0_18 = arith.constant 0 : index
    %67 = vector.load %arg6[%c0_15, %c1_16, %c0_17, %c0_18] : memref<1x8x8x8xf32, #tpu.memory_space<vmem>>, vector<1x1x8x8xf32>
    %68 = vector.shape_cast %67 : vector<1x1x8x8xf32> to vector<8x8xf32>
    %69 = vector.shape_cast %66 : vector<8x8xf32> to vector<1x1x8x8xf32>
    tpu.vector_store %arg6[%c0_15, %c1_16, %c0_17, %c0_18], %69 {strides = array<i32>} : memref<1x8x8x8xf32, #tpu.memory_space<vmem>>, vector<1x1x8x8xf32>,
    %c8 = arith.constant 8 : index
    %70 = memref.load %arg1[%c8] : memref<32xf32, #tpu.memory_space<smem>>
    %71 = vector.extract_strided_slice %11 {offsets = [0, 0, 0], sizes = [1, 8, 8], strides = [1, 1, 1]} : vector<4x8x8xf32> to vector<1x8x8xf32>
    %72 = vector.shape_cast %71 : vector<1x8x8xf32> to vector<8x8xf32>
    %73 = vector.broadcast %70 : f32 to vector<8x8xf32>
    %74 = arith.mulf %73, %72 : vector<8x8xf32>
    %c9 = arith.constant 9 : index
    %75 = memref.load %arg1[%c9] : memref<32xf32, #tpu.memory_space<smem>>
    %76 = vector.extract_strided_slice %11 {offsets = [1, 0, 0], sizes = [1, 8, 8], strides = [1, 1, 1]} : vector<4x8x8xf32> to vector<1x8x8xf32>
    %77 = vector.shape_cast %76 : vector<1x8x8xf32> to vector<8x8xf32>
    %78 = vector.broadcast %75 : f32 to vector<8x8xf32>
    %79 = arith.mulf %78, %77 : vector<8x8xf32>
    %80 = arith.addf %74, %79 : vector<8x8xf32>
    %c10 = arith.constant 10 : index
    %81 = memref.load %arg1[%c10] : memref<32xf32, #tpu.memory_space<smem>>
    %82 = vector.extract_strided_slice %11 {offsets = [2, 0, 0], sizes = [1, 8, 8], strides = [1, 1, 1]} : vector<4x8x8xf32> to vector<1x8x8xf32>
    %83 = vector.shape_cast %82 : vector<1x8x8xf32> to vector<8x8xf32>
    %84 = vector.broadcast %81 : f32 to vector<8x8xf32>
    %85 = arith.mulf %84, %83 : vector<8x8xf32>
    %86 = arith.addf %80, %85 : vector<8x8xf32>
    %c11 = arith.constant 11 : index
    %87 = memref.load %arg1[%c11] : memref<32xf32, #tpu.memory_space<smem>>
    %88 = vector.extract_strided_slice %11 {offsets = [3, 0, 0], sizes = [1, 8, 8], strides = [1, 1, 1]} : vector<4x8x8xf32> to vector<1x8x8xf32>
    %89 = vector.shape_cast %88 : vector<1x8x8xf32> to vector<8x8xf32>
    %90 = vector.broadcast %87 : f32 to vector<8x8xf32>
    %91 = arith.mulf %90, %89 : vector<8x8xf32>
    %92 = arith.addf %86, %91 : vector<8x8xf32>
    %c2_19 = arith.constant 2 : index
    %93 = memref.load %arg2[%c2_19] : memref<8xf32, #tpu.memory_space<smem>>
    %94 = vector.broadcast %93 : f32 to vector<8x8xf32>
    %95 = arith.addf %92, %94 : vector<8x8xf32>
    %c0_20 = arith.constant 0 : index
    %c2_21 = arith.constant 2 : index
    %c0_22 = arith.constant 0 : index
    %c0_23 = arith.constant 0 : index
    %96 = vector.load %arg6[%c0_20, %c2_21, %c0_22, %c0_23] : memref<1x8x8x8xf32, #tpu.memory_space<vmem>>, vector<1x1x8x8xf32>
    %97 = vector.shape_cast %96 : vector<1x1x8x8xf32> to vector<8x8xf32>
    %98 = vector.shape_cast %95 : vector<8x8xf32> to vector<1x1x8x8xf32>
    tpu.vector_store %arg6[%c0_20, %c2_21, %c0_22, %c0_23], %98 {strides = array<i32>} : memref<1x8x8x8xf32, #tpu.memory_space<vmem>>, vector<1x1x8x8xf32>,
    %c12 = arith.constant 12 : index
    %99 = memref.load %arg1[%c12] : memref<32xf32, #tpu.memory_space<smem>>
    %100 = vector.extract_strided_slice %11 {offsets = [0, 0, 0], sizes = [1, 8, 8], strides = [1, 1, 1]} : vector<4x8x8xf32> to vector<1x8x8xf32>
    %101 = vector.shape_cast %100 : vector<1x8x8xf32> to vector<8x8xf32>
    %102 = vector.broadcast %99 : f32 to vector<8x8xf32>
    %103 = arith.mulf %102, %101 : vector<8x8xf32>
    %c13 = arith.constant 13 : index
    %104 = memref.load %arg1[%c13] : memref<32xf32, #tpu.memory_space<smem>>
    %105 = vector.extract_strided_slice %11 {offsets = [1, 0, 0], sizes = [1, 8, 8], strides = [1, 1, 1]} : vector<4x8x8xf32> to vector<1x8x8xf32>
    %106 = vector.shape_cast %105 : vector<1x8x8xf32> to vector<8x8xf32>
    %107 = vector.broadcast %104 : f32 to vector<8x8xf32>
    %108 = arith.mulf %107, %106 : vector<8x8xf32>
    %109 = arith.addf %103, %108 : vector<8x8xf32>
    %c14 = arith.constant 14 : index
    %110 = memref.load %arg1[%c14] : memref<32xf32, #tpu.memory_space<smem>>
    %111 = vector.extract_strided_slice %11 {offsets = [2, 0, 0], sizes = [1, 8, 8], strides = [1, 1, 1]} : vector<4x8x8xf32> to vector<1x8x8xf32>
    %112 = vector.shape_cast %111 : vector<1x8x8xf32> to vector<8x8xf32>
    %113 = vector.broadcast %110 : f32 to vector<8x8xf32>
    %114 = arith.mulf %113, %112 : vector<8x8xf32>
    %115 = arith.addf %109, %114 : vector<8x8xf32>
    %c15 = arith.constant 15 : index
    %116 = memref.load %arg1[%c15] : memref<32xf32, #tpu.memory_space<smem>>
    %117 = vector.extract_strided_slice %11 {offsets = [3, 0, 0], sizes = [1, 8, 8], strides = [1, 1, 1]} : vector<4x8x8xf32> to vector<1x8x8xf32>
    %118 = vector.shape_cast %117 : vector<1x8x8xf32> to vector<8x8xf32>
    %119 = vector.broadcast %116 : f32 to vector<8x8xf32>
    %120 = arith.mulf %119, %118 : vector<8x8xf32>
    %121 = arith.addf %115, %120 : vector<8x8xf32>
    %c3_24 = arith.constant 3 : index
    %122 = memref.load %arg2[%c3_24] : memref<8xf32, #tpu.memory_space<smem>>
    %123 = vector.broadcast %122 : f32 to vector<8x8xf32>
    %124 = arith.addf %121, %123 : vector<8x8xf32>
    %c0_25 = arith.constant 0 : index
    %c3_26 = arith.constant 3 : index
    %c0_27 = arith.constant 0 : index
    %c0_28 = arith.constant 0 : index
    %125 = vector.load %arg6[%c0_25, %c3_26, %c0_27, %c0_28] : memref<1x8x8x8xf32, #tpu.memory_space<vmem>>, vector<1x1x8x8xf32>
    %126 = vector.shape_cast %125 : vector<1x1x8x8xf32> to vector<8x8xf32>
    %127 = vector.shape_cast %124 : vector<8x8xf32> to vector<1x1x8x8xf32>
    tpu.vector_store %arg6[%c0_25, %c3_26, %c0_27, %c0_28], %127 {strides = array<i32>} : memref<1x8x8x8xf32, #tpu.memory_space<vmem>>, vector<1x1x8x8xf32>,
    %c16 = arith.constant 16 : index
    %128 = memref.load %arg1[%c16] : memref<32xf32, #tpu.memory_space<smem>>
    %129 = vector.extract_strided_slice %11 {offsets = [0, 0, 0], sizes = [1, 8, 8], strides = [1, 1, 1]} : vector<4x8x8xf32> to vector<1x8x8xf32>
    %130 = vector.shape_cast %129 : vector<1x8x8xf32> to vector<8x8xf32>
    %131 = vector.broadcast %128 : f32 to vector<8x8xf32>
    %132 = arith.mulf %131, %130 : vector<8x8xf32>
    %c17 = arith.constant 17 : index
    %133 = memref.load %arg1[%c17] : memref<32xf32, #tpu.memory_space<smem>>
    %134 = vector.extract_strided_slice %11 {offsets = [1, 0, 0], sizes = [1, 8, 8], strides = [1, 1, 1]} : vector<4x8x8xf32> to vector<1x8x8xf32>
    %135 = vector.shape_cast %134 : vector<1x8x8xf32> to vector<8x8xf32>
    %136 = vector.broadcast %133 : f32 to vector<8x8xf32>
    %137 = arith.mulf %136, %135 : vector<8x8xf32>
    %138 = arith.addf %132, %137 : vector<8x8xf32>
    %c18 = arith.constant 18 : index
    %139 = memref.load %arg1[%c18] : memref<32xf32, #tpu.memory_space<smem>>
    %140 = vector.extract_strided_slice %11 {offsets = [2, 0, 0], sizes = [1, 8, 8], strides = [1, 1, 1]} : vector<4x8x8xf32> to vector<1x8x8xf32>
    %141 = vector.shape_cast %140 : vector<1x8x8xf32> to vector<8x8xf32>
    %142 = vector.broadcast %139 : f32 to vector<8x8xf32>
    %143 = arith.mulf %142, %141 : vector<8x8xf32>
    %144 = arith.addf %138, %143 : vector<8x8xf32>
    %c19 = arith.constant 19 : index
    %145 = memref.load %arg1[%c19] : memref<32xf32, #tpu.memory_space<smem>>
    %146 = vector.extract_strided_slice %11 {offsets = [3, 0, 0], sizes = [1, 8, 8], strides = [1, 1, 1]} : vector<4x8x8xf32> to vector<1x8x8xf32>
    %147 = vector.shape_cast %146 : vector<1x8x8xf32> to vector<8x8xf32>
    %148 = vector.broadcast %145 : f32 to vector<8x8xf32>
    %149 = arith.mulf %148, %147 : vector<8x8xf32>
    %150 = arith.addf %144, %149 : vector<8x8xf32>
    %c4_29 = arith.constant 4 : index
    %151 = memref.load %arg2[%c4_29] : memref<8xf32, #tpu.memory_space<smem>>
    %152 = vector.broadcast %151 : f32 to vector<8x8xf32>
    %153 = arith.addf %150, %152 : vector<8x8xf32>
    %c0_30 = arith.constant 0 : index
    %c4_31 = arith.constant 4 : index
    %c0_32 = arith.constant 0 : index
    %c0_33 = arith.constant 0 : index
    %154 = vector.load %arg6[%c0_30, %c4_31, %c0_32, %c0_33] : memref<1x8x8x8xf32, #tpu.memory_space<vmem>>, vector<1x1x8x8xf32>
    %155 = vector.shape_cast %154 : vector<1x1x8x8xf32> to vector<8x8xf32>
    %156 = vector.shape_cast %153 : vector<8x8xf32> to vector<1x1x8x8xf32>
    tpu.vector_store %arg6[%c0_30, %c4_31, %c0_32, %c0_33], %156 {strides = array<i32>} : memref<1x8x8x8xf32, #tpu.memory_space<vmem>>, vector<1x1x8x8xf32>,
    %c20 = arith.constant 20 : index
    %157 = memref.load %arg1[%c20] : memref<32xf32, #tpu.memory_space<smem>>
    %158 = vector.extract_strided_slice %11 {offsets = [0, 0, 0], sizes = [1, 8, 8], strides = [1, 1, 1]} : vector<4x8x8xf32> to vector<1x8x8xf32>
    %159 = vector.shape_cast %158 : vector<1x8x8xf32> to vector<8x8xf32>
    %160 = vector.broadcast %157 : f32 to vector<8x8xf32>
    %161 = arith.mulf %160, %159 : vector<8x8xf32>
    %c21 = arith.constant 21 : index
    %162 = memref.load %arg1[%c21] : memref<32xf32, #tpu.memory_space<smem>>
    %163 = vector.extract_strided_slice %11 {offsets = [1, 0, 0], sizes = [1, 8, 8], strides = [1, 1, 1]} : vector<4x8x8xf32> to vector<1x8x8xf32>
    %164 = vector.shape_cast %163 : vector<1x8x8xf32> to vector<8x8xf32>
    %165 = vector.broadcast %162 : f32 to vector<8x8xf32>
    %166 = arith.mulf %165, %164 : vector<8x8xf32>
    %167 = arith.addf %161, %166 : vector<8x8xf32>
    %c22 = arith.constant 22 : index
    %168 = memref.load %arg1[%c22] : memref<32xf32, #tpu.memory_space<smem>>
    %169 = vector.extract_strided_slice %11 {offsets = [2, 0, 0], sizes = [1, 8, 8], strides = [1, 1, 1]} : vector<4x8x8xf32> to vector<1x8x8xf32>
    %170 = vector.shape_cast %169 : vector<1x8x8xf32> to vector<8x8xf32>
    %171 = vector.broadcast %168 : f32 to vector<8x8xf32>
    %172 = arith.mulf %171, %170 : vector<8x8xf32>
    %173 = arith.addf %167, %172 : vector<8x8xf32>
    %c23 = arith.constant 23 : index
    %174 = memref.load %arg1[%c23] : memref<32xf32, #tpu.memory_space<smem>>
    %175 = vector.extract_strided_slice %11 {offsets = [3, 0, 0], sizes = [1, 8, 8], strides = [1, 1, 1]} : vector<4x8x8xf32> to vector<1x8x8xf32>
    %176 = vector.shape_cast %175 : vector<1x8x8xf32> to vector<8x8xf32>
    %177 = vector.broadcast %174 : f32 to vector<8x8xf32>
    %178 = arith.mulf %177, %176 : vector<8x8xf32>
    %179 = arith.addf %173, %178 : vector<8x8xf32>
    %c5_34 = arith.constant 5 : index
    %180 = memref.load %arg2[%c5_34] : memref<8xf32, #tpu.memory_space<smem>>
    %181 = vector.broadcast %180 : f32 to vector<8x8xf32>
    %182 = arith.addf %179, %181 : vector<8x8xf32>
    %c0_35 = arith.constant 0 : index
    %c5_36 = arith.constant 5 : index
    %c0_37 = arith.constant 0 : index
    %c0_38 = arith.constant 0 : index
    %183 = vector.load %arg6[%c0_35, %c5_36, %c0_37, %c0_38] : memref<1x8x8x8xf32, #tpu.memory_space<vmem>>, vector<1x1x8x8xf32>
    %184 = vector.shape_cast %183 : vector<1x1x8x8xf32> to vector<8x8xf32>
    %185 = vector.shape_cast %182 : vector<8x8xf32> to vector<1x1x8x8xf32>
    tpu.vector_store %arg6[%c0_35, %c5_36, %c0_37, %c0_38], %185 {strides = array<i32>} : memref<1x8x8x8xf32, #tpu.memory_space<vmem>>, vector<1x1x8x8xf32>,
    %c24 = arith.constant 24 : index
    %186 = memref.load %arg1[%c24] : memref<32xf32, #tpu.memory_space<smem>>
    %187 = vector.extract_strided_slice %11 {offsets = [0, 0, 0], sizes = [1, 8, 8], strides = [1, 1, 1]} : vector<4x8x8xf32> to vector<1x8x8xf32>
    %188 = vector.shape_cast %187 : vector<1x8x8xf32> to vector<8x8xf32>
    %189 = vector.broadcast %186 : f32 to vector<8x8xf32>
    %190 = arith.mulf %189, %188 : vector<8x8xf32>
    %c25 = arith.constant 25 : index
    %191 = memref.load %arg1[%c25] : memref<32xf32, #tpu.memory_space<smem>>
    %192 = vector.extract_strided_slice %11 {offsets = [1, 0, 0], sizes = [1, 8, 8], strides = [1, 1, 1]} : vector<4x8x8xf32> to vector<1x8x8xf32>
    %193 = vector.shape_cast %192 : vector<1x8x8xf32> to vector<8x8xf32>
    %194 = vector.broadcast %191 : f32 to vector<8x8xf32>
    %195 = arith.mulf %194, %193 : vector<8x8xf32>
    %196 = arith.addf %190, %195 : vector<8x8xf32>
    %c26 = arith.constant 26 : index
    %197 = memref.load %arg1[%c26] : memref<32xf32, #tpu.memory_space<smem>>
    %198 = vector.extract_strided_slice %11 {offsets = [2, 0, 0], sizes = [1, 8, 8], strides = [1, 1, 1]} : vector<4x8x8xf32> to vector<1x8x8xf32>
    %199 = vector.shape_cast %198 : vector<1x8x8xf32> to vector<8x8xf32>
    %200 = vector.broadcast %197 : f32 to vector<8x8xf32>
    %201 = arith.mulf %200, %199 : vector<8x8xf32>
    %202 = arith.addf %196, %201 : vector<8x8xf32>
    %c27 = arith.constant 27 : index
    %203 = memref.load %arg1[%c27] : memref<32xf32, #tpu.memory_space<smem>>
    %204 = vector.extract_strided_slice %11 {offsets = [3, 0, 0], sizes = [1, 8, 8], strides = [1, 1, 1]} : vector<4x8x8xf32> to vector<1x8x8xf32>
    %205 = vector.shape_cast %204 : vector<1x8x8xf32> to vector<8x8xf32>
    %206 = vector.broadcast %203 : f32 to vector<8x8xf32>
    %207 = arith.mulf %206, %205 : vector<8x8xf32>
    %208 = arith.addf %202, %207 : vector<8x8xf32>
    %c6_39 = arith.constant 6 : index
    %209 = memref.load %arg2[%c6_39] : memref<8xf32, #tpu.memory_space<smem>>
    %210 = vector.broadcast %209 : f32 to vector<8x8xf32>
    %211 = arith.addf %208, %210 : vector<8x8xf32>
    %c0_40 = arith.constant 0 : index
    %c6_41 = arith.constant 6 : index
    %c0_42 = arith.constant 0 : index
    %c0_43 = arith.constant 0 : index
    %212 = vector.load %arg6[%c0_40, %c6_41, %c0_42, %c0_43] : memref<1x8x8x8xf32, #tpu.memory_space<vmem>>, vector<1x1x8x8xf32>
    %213 = vector.shape_cast %212 : vector<1x1x8x8xf32> to vector<8x8xf32>
    %214 = vector.shape_cast %211 : vector<8x8xf32> to vector<1x1x8x8xf32>
    tpu.vector_store %arg6[%c0_40, %c6_41, %c0_42, %c0_43], %214 {strides = array<i32>} : memref<1x8x8x8xf32, #tpu.memory_space<vmem>>, vector<1x1x8x8xf32>,
    %c28 = arith.constant 28 : index
    %215 = memref.load %arg1[%c28] : memref<32xf32, #tpu.memory_space<smem>>
    %216 = vector.extract_strided_slice %11 {offsets = [0, 0, 0], sizes = [1, 8, 8], strides = [1, 1, 1]} : vector<4x8x8xf32> to vector<1x8x8xf32>
    %217 = vector.shape_cast %216 : vector<1x8x8xf32> to vector<8x8xf32>
    %218 = vector.broadcast %215 : f32 to vector<8x8xf32>
    %219 = arith.mulf %218, %217 : vector<8x8xf32>
    %c29 = arith.constant 29 : index
    %220 = memref.load %arg1[%c29] : memref<32xf32, #tpu.memory_space<smem>>
    %221 = vector.extract_strided_slice %11 {offsets = [1, 0, 0], sizes = [1, 8, 8], strides = [1, 1, 1]} : vector<4x8x8xf32> to vector<1x8x8xf32>
    %222 = vector.shape_cast %221 : vector<1x8x8xf32> to vector<8x8xf32>
    %223 = vector.broadcast %220 : f32 to vector<8x8xf32>
    %224 = arith.mulf %223, %222 : vector<8x8xf32>
    %225 = arith.addf %219, %224 : vector<8x8xf32>
    %c30 = arith.constant 30 : index
    %226 = memref.load %arg1[%c30] : memref<32xf32, #tpu.memory_space<smem>>
    %227 = vector.extract_strided_slice %11 {offsets = [2, 0, 0], sizes = [1, 8, 8], strides = [1, 1, 1]} : vector<4x8x8xf32> to vector<1x8x8xf32>
    %228 = vector.shape_cast %227 : vector<1x8x8xf32> to vector<8x8xf32>
    %229 = vector.broadcast %226 : f32 to vector<8x8xf32>
    %230 = arith.mulf %229, %228 : vector<8x8xf32>
    %231 = arith.addf %225, %230 : vector<8x8xf32>
    %c31 = arith.constant 31 : index
    %232 = memref.load %arg1[%c31] : memref<32xf32, #tpu.memory_space<smem>>
    %233 = vector.extract_strided_slice %11 {offsets = [3, 0, 0], sizes = [1, 8, 8], strides = [1, 1, 1]} : vector<4x8x8xf32> to vector<1x8x8xf32>
    %234 = vector.shape_cast %233 : vector<1x8x8xf32> to vector<8x8xf32>
    %235 = vector.broadcast %232 : f32 to vector<8x8xf32>
    %236 = arith.mulf %235, %234 : vector<8x8xf32>
    %237 = arith.addf %231, %236 : vector<8x8xf32>
    %c7_44 = arith.constant 7 : index
    %238 = memref.load %arg2[%c7_44] : memref<8xf32, #tpu.memory_space<smem>>
    %239 = vector.broadcast %238 : f32 to vector<8x8xf32>
    %240 = arith.addf %237, %239 : vector<8x8xf32>
    %c0_45 = arith.constant 0 : index
    %c7_46 = arith.constant 7 : index
    %c0_47 = arith.constant 0 : index
    %c0_48 = arith.constant 0 : index
    %241 = vector.load %arg6[%c0_45, %c7_46, %c0_47, %c0_48] : memref<1x8x8x8xf32, #tpu.memory_space<vmem>>, vector<1x1x8x8xf32>
    %242 = vector.shape_cast %241 : vector<1x1x8x8xf32> to vector<8x8xf32>
    %243 = vector.shape_cast %240 : vector<8x8xf32> to vector<1x1x8x8xf32>
    tpu.vector_store %arg6[%c0_45, %c7_46, %c0_47, %c0_48], %243 {strides = array<i32>} : memref<1x8x8x8xf32, #tpu.memory_space<vmem>>, vector<1x1x8x8xf32>,
    return
  }
  func.func @transform_0(%arg0: i32) -> i32 {
    %c0_i32 = arith.constant 0 : i32
    %c0_i32_0 = arith.constant 0 : i32
    return %c0_i32 : i32
  }
  func.func @transform_1(%arg0: i32) -> i32 {
    %c0_i32 = arith.constant 0 : i32
    %c0_i32_0 = arith.constant 0 : i32
    return %c0_i32 : i32
  }
  func.func @transform_2(%arg0: i32) -> (i32, i32) {
    %c0_i32 = arith.constant 0 : i32
    %c0_i32_0 = arith.constant 0 : i32
    %c0_i32_1 = arith.constant 0 : i32
    return %c0_i32, %c0_i32_0 : i32, i32
  }
  func.func @transform_3(%arg0: i32) -> (i32, i32) {
    %c0_i32 = arith.constant 0 : i32
    %c0_i32_0 = arith.constant 0 : i32
    %c0_i32_1 = arith.constant 0 : i32
    return %c0_i32, %c0_i32_0 : i32, i32
  }
  func.func @transform_4(%arg0: i32) -> (i32, i32, i32, i32) {
    %c0_i32 = arith.constant 0 : i32
    %c0_i32_0 = arith.constant 0 : i32
    %c0_i32_1 = arith.constant 0 : i32
    %c0_i32_2 = arith.constant 0 : i32
    return %arg0, %c0_i32, %c0_i32_0, %c0_i32_1 : i32, i32, i32, i32
  }
  func.func @transform_5(%arg0: i32) -> (i32, i32, i32, i32) {
    %c0_i32 = arith.constant 0 : i32
    %c0_i32_0 = arith.constant 0 : i32
    %c0_i32_1 = arith.constant 0 : i32
    %c0_i32_2 = arith.constant 0 : i32
    return %arg0, %c0_i32, %c0_i32_0, %c0_i32_1 : i32, i32, i32, i32
  }
}

</mosaic_0001>

<bundles_post_ra>
// kernel: tpu_custom_call.1
= control target key start
LH: loop header
LB: loop body
LE: loop exit
PB: predicated region body
PF: predicated region fallthrough
CT: control target
= control target key end

     0   :  { %s1550_s0 = inlined_call_operand.vmem [shape: f32[32], index: 0, kind: input, shape index: {}]   ;;  %s1551_s1 = inlined_call_operand.vmem [shape: f32[8], index: 1, kind: input, shape index: {}]   ;;  %s1552_s2 = inlined_call_operand.vmem [shape: f32[16,8], index: 2, kind: input, shape index: {}]   ;;  %s1553_s3 = inlined_call_operand.vmem [shape: f32[16,8], index: 3, kind: input, shape index: {}]   ;;  %s1554_s4 = inlined_call_operand.hbm [shape: f32[2,4,16,16], index: 4, kind: input, shape index: {}]   ;;  %s1555_s5 = inlined_call_operand.hbm [shape: f32[2,8,8,8], index: 5, kind: output, shape index: {}]  }
   0x1   :  { %1570 = sst [smem:[#allocation26_spill]] %s1550_s0 }
   0x2   :  { %1571 = sst [smem:[#allocation27_spill]] %s1551_s1 }
   0x3   :  { %1572 = sst [smem:[#allocation28_spill]] %s1552_s2 }
   0x4   :  { %1573 = sst [smem:[#allocation29_spill]] %s1553_s3 }
   0x5   :  { %1574 = sst [smem:[#allocation30_spill]] %s1554_s4 }
   0x6   :  { %1575 = sst [smem:[#allocation31_spill]] %s1555_s5 }
   0x7   :  { %10 = vsyncpa [#allocation5], 0 }
   0x8   :  { %11 = vsyncpa [#allocation7], 0 }
   0x9   :  { %12 = vsyncpa [#allocation3], 0 }
   0xa   :  { %14 = vsyncpa [#allocation3 + $0x1], 0 }
   0xb   :  { %15 = vsyncpa [#allocation4], 0 }
   0xc   :  { %17 = vsyncpa [#allocation4 + $0x1], 0  ;;  %s1245_s18 = smov 0   ;;  %s1247_s19 = smov 0  }
   0xd   :  { %s1249_s20 = smov 0   ;;  %s1251_s21 = smov 0  }
   0xe LB: > { %1576 = sst [smem:[#allocation14_spill]] %s1195_s18  ;;  %s1266_s22 = sadd.s32 4294967295, %s1207_s21   ;;  %s1207_s21 = sphi %s1251_s21, %s1610_s21   ;;  %s1203_s20 = sphi %s1249_s20, %s1613_s20   ;;  %s1199_s19 = sphi %s1247_s19, %s1612_s19   ;;  %s1195_s18 = sphi %s1245_s18, %s1611_s18  }
   0xf   : > { %1577 = sst [smem:[#allocation15_spill]] %s1199_s19  ;;  %s918_s23 = sadd.s32 4294967294, %s1207_s21  }
  0x10   : > { %1578 = sst [smem:[#allocation16_spill]] %s1203_s20  ;;  %s1270_s24 = sadd.s32 1, %s1207_s21  }
  0x11   : > { %1579 = sst [smem:[#allocation17_spill]] %s1207_s21  ;;  %s114_s25 = sadd.s32 1, %s1203_s20 }
  0x12   : > { %1580 = sst [smem:[#allocation18_spill]] %s1266_s22  ;;  %s111_s26 = ssub.s32 %s1207_s21, %s1270_s24 }
  0x13   : > { %1581 = sst [smem:[#allocation19_spill]] %s1270_s24  ;;  %p121_p0 = scmp.ne.s32.totalorder %s1203_s20, %s1199_s19 }
  0x14   : > { %p112_p1 = scmp.eq.s32.totalorder %s111_s26, 0  ;;  %p122_p2 = scmp.eq.s32.totalorder %s1207_s21, 0 }
  0x15   : > { %p127_p3 = scmp.ne.s32.totalorder %s1199_s19, %s1195_s18  ;;  %p128_p4 = scmp.eq.s32.totalorder %s1266_s22, 0 }
  0x16   : > { %s1282_s27 = scalar_select %p112_p1, %s1203_s20, %s114_s25  }
  0x17   : > { %p1284_p5 = por %p122_p2, %p121_p0  ;;  %p1290_p6 = por %p128_p4, %p127_p3 }
  0x18   : > { %1582 = sst [smem:[#allocation20_spill]] %s1282_s27  ;;  %p151_p7 = scmp.eq.s32.totalorder %s1266_s22, 1 }
  0x19   : > { %p157_p8 = scmp.eq.s32.totalorder %s918_s23, 1  ;;  %p919_p9 = scmp.ge.s32.totalorder %s1207_s21, 1 }
  0x1a   : > { %p164_p10 = scmp.lt.s32.totalorder %s1207_s21, 3  ;;  %p1297_p11 = por %p151_p7, %p121_p0 }
  0x1b   : > { %p1301_p12 = por %p157_p8, %p127_p3  ;;  %s1590_s0 = sld [smem:[#allocation26_spill]] }
  0x1c   : > { %s1585_s30 = scalar_select %p1297_p11, 1, 0 }
  0x1d   : > { %s1587_s6 = scalar_select %p1301_p12, 1, 0 }
  0x1e   : > { %1586 = sst [smem:[#allocation21_spill]] %s1585_s30  ;;  %p1305_p13 = pnand %p919_p9, %p164_p10 }
  0x1f   : > { %1588 = sst [smem:[#allocation22_spill]] %s1587_s6  ;;  %p1030_p2 = scmp.lt.s32.totalorder %s1207_s21, 2 }
  0x20   : > { %p1013_p1 = pneg %p1305_p13  ;;  %s1591_s1 = sld [smem:[#allocation27_spill]] }
  0x21   : > { %s176_s10 = sshll.u32 %s1590_s0, 4  ;;  %p1323_p7 = pnand %p1030_p2, %p1284_p5  ;;  %s177_s10 = int_to_ptr.vmem [resolvable:$true] %s176_s10 }
  0x22   : > { %p1014_p3 = pnand %p1013_p1, %p128_p4  ;;  %s1209_s15 = smov [#allocation2]  }
  0x23   : > { %s203_s16 = sand.u32 1, %s1203_s20   ;;  %s1210_s17 = smov [#allocation6]  }
  0x24   : > { %1016 = dma.vmem_to_smem (!%p1014_p3), %s177_s10, 16, %s1209_s15, [#allocation5]  }
  0x25   : > { %s923_s23 = sshll.u32 %s203_s16, 6  ;;  %s993_s25 = sshll.u32 %s1207_s21, 6 }
  0x26   : > { %s186_s13 = sshll.u32 %s1591_s1, 4  ;;  %s1593_s4 = sld [smem:[#allocation30_spill]]  ;;  %s187_s13 = int_to_ptr.vmem [resolvable:$true] %s186_s13 }
  0x27   : > { %1019 = dma.vmem_to_smem (!%p1014_p3), %s187_s13, 16, %s1210_s17, [#allocation7]  }
  0x28   : > { %s207_s11 = scalar_lea.vmem [#allocation8], %s923_s23  ;;  %s204_s0 = scalar_lea.sflag [#allocation3], %s203_s16 }
  0x29   : > { %s215_s12 = sshll.u32 %s207_s11, 4  ;;  %p1107_p8 = pneg %p1323_p7  ;;  %s216_s12 = int_to_ptr.vmem [resolvable:$true] %s215_s12 }
  0x2c   : > { %s212_s9 = scalar_lea.hbm %s1593_s4, %s993_s25  ;;  %s1110_s15 = scalar_lea.hbm %s1593_s4, 128 }
  0x2d   : > { %s213_s28 = sshll.u32 %s212_s9, 4  ;;  %s214_s28 = int_to_ptr.hbm [resolvable:$true] %s213_s28 }
  0x2e   : > { %s1103_s1 = sshra.s32 %s214_s28, 4  ;;  %s1104_s1 = int_to_ptr.hbm [resolvable:$true] %s1103_s1 }
  0x2f   : > { %s1105_s27 = scalar_lea.hbm %s1104_s1, 64  ;;  %p1111_p1 = scmp.lt.s32.totalorder %s1104_s1, %s1593_s4 }
  0x30   : > { %p1106_p5 = scmp.ne.s32.totalorder %s1104_s1, %s1105_s27  ;;  %p1112_p2 = scmp.lt.s32.totalorder %s1110_s15, %s1105_s27 }
  0x32   : > { %p1108_p9 = pnand %p1107_p8, %p1106_p5  ;;  %p1113_p3 = por %p1112_p2, %p1111_p1 }
  0x34   : > { %p1109_p10 = pneg %p1108_p9 }
  0x36   : > { %p1114_p0 = pnand %p1113_p3, %p1109_p10 }
  0x38   : > { %1117 = shalt.err (!%p1114_p0)
}
  0x39   : > { %s1211_s16 = smov 128   ;;  %s1212_s23 = smov 8  }
  0x3a   : > { %1023 = dma.hbm_to_vmem [thread:$0]  (!%p1323_p7), %s214_s28, 1024, %s216_s12, %s204_s0, %s1211_s16, %s1211_s16, %s1212_s23  }
  0x3b   : > { %227 = sbr.rel (%p1305_p13) target bundleno = 708 (0x2c4), region = 40 }
  0x40   : > { %1178 = dma.done.wait (%p128_p4), [#allocation5], 16  }
  0x41   : > { %1180 = vsyncadd (%p128_p4), [#allocation5], 4294967280 }
  0x42   : > { %1182 = dma.done.wait (%p128_p4), [#allocation7], 16  }
  0x43   : > { %1184 = vsyncadd (%p128_p4), [#allocation7], 4294967280  ;;  %s1353_s1 = sand.u32 1, %s1199_s19  }
  0x44   : > { %1594 = sst [smem:[#allocation23_spill]] %s1353_s1  ;;  %s1556_s0 = sshll.u32 %s1353_s1, 6 }
  0x45   : > { %s240_s27 = scalar_lea.sflag [#allocation3], %s1353_s1  ;;  %s243_s7 = scalar_lea.vmem [#allocation8], %s1556_s0 }
  0x46   : > { %1186 = dma.done.wait (%p1290_p6), %s240_s27, 1024  }
  0x47   : > { %1188 = vsyncadd (%p1290_p6), %s240_s27, 4294966272 }
  0x48   : > { %249 = sfence }
  0x49   : > { %s1595_s2 = sld [smem:[#allocation28_spill]]  ;;  %v272_v2 = vld [vmem:[%s243_s7] sm:$0xff]  ;;  %vm282_vm0 = vcmask 130048   ;;  %v275_v3 = vld [vmem:[%s243_s7 + $0x18] sm:$0xff]  ;;  %v278_v4 = vld [vmem:[%s243_s7 + $0x30] sm:$0xff]  ;;  %vm665_vm1 = vcmask 64512  }
  0x4a   : > { %v273_v5 = vld [vmem:[%s243_s7 + $0x8] sm:$0xff]  ;;  %v276_v6 = vld [vmem:[%s243_s7 + $0x20] sm:$0xff]  ;;  %v279_v7 = vld [vmem:[%s243_s7 + $0x38] sm:$0xff]  ;;  %s1596_s3 = sld [smem:[#allocation29_spill]] }
  0x4b   : > { %v274_v8 = vld [vmem:[%s243_s7 + $0x10] sm:$0xff]  ;;  %v277_v9 = vld [vmem:[%s243_s7 + $0x28] sm:$0xff]  ;;  %s1387_s10 = sld [smem:[#allocation2 + $0x1]] }
  0x4c   : > { %s1389_s13 = sld [smem:[#allocation2 + $0x5]] }
  0x4d   : > { %s1391_s15 = sld [smem:[#allocation2 + $0x9]] }
  0x4e   : > { %s1393_s17 = sld [smem:[#allocation2 + $0xd]] }
  0x4f   : > { %v281_v0 = vld [vmem:[%s1595_s2 + $0x8] sm:$0xff]  ;;  %v280_v1 = vld [vmem:[%s1595_s2] sm:$0xff]  ;;  %s1395_s25 = sld [smem:[#allocation2 + $0x11]] }
  0x50   : > { %321 = vmatpush.msra.mxu0 %v281_v0  ;;  %995 = vmatpush.msra.mxu2 %v281_v0  ;;  %v477_v10 = vld [vmem:[%s1596_s3 + $0x8] sm:$0xff]  ;;  %v476_v11 = vld [vmem:[%s1596_s3] sm:$0xff]  ;;  %s1397_s16 = sld [smem:[#allocation2 + $0x15]] }
  0x51   : > { %996 = vmatpush.msra.mxu3 %v281_v0  ;;  %504 = vmatpush.msra.mxu1 %v477_v10  ;;  %s1399_s23 = sld [smem:[#allocation2 + $0x19]]  ;;  %v651_v28 = vstv %s1387_s10 }
  0x52   : > { %322 = vmatpush.msra.mxu0 %v280_v1  ;;  %997 = vmatpush.msra.mxu2 %v280_v1  ;;  %s1401_s27 = sld [smem:[#allocation2 + $0x1d]]  ;;  %v671_v29 = vstv %s1389_s13 }
  0x53   : > { %931 = vmatmul.msk.f32.vlgmr.msra.gmra.mxu0 %vm282_vm0, %v272_v2  ;;  %934 = vmatmul.msk.f32.vlgmr.msra.gmra.mxu2 %vm282_vm0, %v275_v3  ;;  %s1403_s7 = sld [smem:[#allocation2]]  ;;  %v691_v30 = vstv %s1391_s15 }
  0x54   : > { %998 = vmatpush.msra.mxu3 %v280_v1  ;;  %505 = vmatpush.msra.mxu1 %v476_v11  ;;  %s1405_s14 = sld [smem:[#allocation2 + $0x4]]  ;;  %v711_v31 = vstv %s1393_s17 }
  0x55   : > { %937 = vmatmul.msk.f32.vlgmr.msra.gmra.mxu3 %vm282_vm0, %v278_v4  ;;  %s1407_s26 = sld [smem:[#allocation2 + $0x8]]  ;;  %v731_v32 = vstv %s1395_s25 }
  0x56   : > { %999 = vmatpush.msrb.mxu3 %v477_v10  ;;  %s1409_s8 = sld [smem:[#allocation2 + $0xc]]  ;;  %v751_v33 = vstv %s1397_s16 }
  0x57   : > { %s1411_s9 = sld [smem:[#allocation2 + $0x10]]  ;;  %v771_v34 = vstv %s1399_s23 }
  0x58   : > { %1000 = vmatpush.msrb.mxu3 %v476_v11  ;;  %s1413_s29 = sld [smem:[#allocation2 + $0x14]]  ;;  %v791_v35 = vstv %s1401_s27 }
  0x59   : > { %s1415_s11 = sld [smem:[#allocation2 + $0x18]]  ;;  %v648_v36 = vstv %s1403_s7 }
  0x5a   : > { %s1417_s12 = sld [smem:[#allocation2 + $0x1c]]  ;;  %v668_v37 = vstv %s1405_s14 }
  0x5b   : > { %932 = vmatmul.msk.f32.gmra.mxu0 %vm282_vm0, %v273_v5  ;;  %935 = vmatmul.msk.f32.gmra.mxu2 %vm282_vm0, %v276_v6  ;;  %s1419_s28 = sld [smem:[#allocation2 + $0x2]]  ;;  %v688_v38 = vstv %s1407_s26 }
  0x5c   : > { %s1421_s0 = sld [smem:[#allocation2 + $0x6]]  ;;  %v708_v39 = vstv %s1409_s8 }
  0x5d   : > { %938 = vmatmul.msk.f32.gmra.mxu3 %vm282_vm0, %v279_v7  ;;  %s1423_s2 = sld [smem:[#allocation2 + $0xa]]  ;;  %v728_v40 = vstv %s1411_s9 }
  0x5e   : > { %s1425_s3 = sld [smem:[#allocation2 + $0xe]]  ;;  %v748_v41 = vstv %s1413_s29 }
  0x5f   : > { %s1427_s4 = sld [smem:[#allocation2 + $0x12]]  ;;  %v768_v42 = vstv %s1415_s11 }
  0x60   : > { %s1429_s20 = sld [smem:[#allocation2 + $0x16]]  ;;  %v788_v43 = vstv %s1417_s12 }
  0x61   : > { %s1431_s19 = sld [smem:[#allocation2 + $0x1a]]  ;;  %v655_v46 = vstv %s1419_s28 }
  0x62   : > { %s1433_s24 = sld [smem:[#allocation2 + $0x1e]]  ;;  %v675_v47 = vstv %s1421_s0 }
  0x63   : > { %933 = vmatmul.msk.f32.gmra.mxu0 %vm282_vm0, %v274_v8  ;;  %936 = vmatmul.msk.f32.gmra.mxu2 %vm282_vm0, %v277_v9  ;;  %s1435_s21 = sld [smem:[#allocation2 + $0x3]]  ;;  %v695_v48 = vstv %s1423_s2 }
  0x64   : > { %s1437_s6 = sld [smem:[#allocation2 + $0x7]]  ;;  %v715_v49 = vstv %s1425_s3 }
  0x65   : > { %s1439_s18 = sld [smem:[#allocation6]]  ;;  %v735_v50 = vstv %s1427_s4 }
  0x66   : > { %s1441_s30 = sld [smem:[#allocation6 + $0x1]]  ;;  %v755_v51 = vstv %s1429_s20 }
  0x67   : > { %s1443_s5 = sld [smem:[#allocation2 + $0xb]]  ;;  %v775_v52 = vstv %s1431_s19 }
  0x68   : > { %s1445_s1 = sld [smem:[#allocation2 + $0xf]]  ;;  %v795_v53 = vstv %s1433_s24 }
  0x69   : > { %s1447_s22 = sld [smem:[#allocation6 + $0x2]]  ;;  %v659_v54 = vstv %s1435_s21 }
  0x6a   : > { %s1465_s10 = sld [smem:[#allocation2 + $0x17]]  ;;  %v679_v55 = vstv %s1437_s6 }
  0x6b   : > { %1597 = sst [smem:[#allocation24_spill]] %s1439_s18 }
  0x6c   : > { %1598 = sst [smem:[#allocation25_spill]] %s1441_s30 }
  0x6d   : > { %s1453_s18 = sld [smem:[#allocation6 + $0x3]]  ;;  %v699_v56 = vstv %s1443_s5 }
  0x6e   : > { %s1459_s30 = sld [smem:[#allocation2 + $0x13]]  ;;  %v719_v57 = vstv %s1445_s1 }
  0x6f   : > { %s1471_s13 = sld [smem:[#allocation2 + $0x1b]] }
  0x70   : > { %s1477_s15 = sld [smem:[#allocation2 + $0x1f]] }
  0x71   : > { %s1599_s17 = sld [smem:[#allocation24_spill]] }
  0x72   : > { %s1600_s25 = sld [smem:[#allocation25_spill]] }
  0x73   : > { %s1495_s2 = sld [smem:[#allocation6 + $0x4]] }
  0x74   : > { %s1497_s3 = sld [smem:[#allocation6 + $0x5]] }
  0x75   : > { %s1499_s4 = sld [smem:[#allocation6 + $0x6]] }
  0x76   : > { %s1601_s5 = sld [smem:[#allocation18_spill]] }
  0x77   : > { %v663_v10 = vstv %s1599_s17  ;;  %s1602_s20 = sld [smem:[#allocation23_spill]] }
  0x78   : > { %v683_v11 = vstv %s1600_s25  ;;  %s1603_s24 = sld [smem:[#allocation31_spill]] }
  0x7c   : > { %s994_s19 = sshll.u32 %s1601_s5, 6 }
  0x7d   : > { %s1604_s6 = sshll.u32 %s1602_s20, 6  ;;  %s808_s27 = scalar_lea.sflag [#allocation4], %s1602_s20 }
  0x7e   : > { %s271_s1 = scalar_lea.vmem [#allocation9], %s1604_s6  ;;  %s1153_s9 = scalar_lea.hbm %s1603_s24, 128 }
  0x7f   : > { %s820_s0 = sshll.u32 %s271_s1, 4  ;;  %s821_s0 = int_to_ptr.vmem [resolvable:$true] %s820_s0 }
  0xd0   : > { %v324_v12 = vpop.f32.mrf.mxu0 }
  0xd1   : > { %348 = vxpose.xlu0.b32.start [1/2] (short) (narrow) %v324_v12, 8  ;;  %v703_v12 = vstv %s1447_s22 }
  0xd6   : > { %v333_v13 = vpop.f32.mrf.mxu2 }
  0xd8   : > { %v327_v14 = vpop.f32.mrf.mxu0  ;;  %v342_v15 = vpop.f32.mrf.mxu3 }
  0xd9   : > { %349 = vxpose.xlu0.b32.end [2/2] (short) (narrow) %v327_v14, 8  ;;  %444 = vxpose.xlu2.b32.start [1/2] (short) (narrow) %v342_v15, 8  ;;  %v739_v14 = vstv %s1459_s30  ;;  %v759_v15 = vstv %s1465_s10  ;;  %s819_s30 = scalar_lea.hbm %s1603_s24, %s994_s19 }
  0xda   : > { %s822_s16 = sshll.u32 %s819_s30, 4  ;;  %s823_s16 = int_to_ptr.hbm [resolvable:$true] %s822_s16 }
  0xdb   : > { %s1147_s7 = sshra.s32 %s823_s16, 4  ;;  %s1148_s7 = int_to_ptr.hbm [resolvable:$true] %s1147_s7 }
  0xdc   : > { %s1149_s14 = scalar_lea.hbm %s1148_s7, 64  ;;  %p1154_p0 = scmp.lt.s32.totalorder %s1148_s7, %s1603_s24 }
  0xdd   : > { %p1150_p4 = scmp.ne.s32.totalorder %s1148_s7, %s1149_s14  ;;  %p1155_p7 = scmp.lt.s32.totalorder %s1153_s9, %s1149_s14 }
  0xde   : > { %v336_v16 = vpop.f32.mrf.mxu2 }
  0xdf   : > { %p1151_p6 = pnand %p1150_p4, %p1297_p11  ;;  %p1156_p5 = por %p1155_p7, %p1154_p0 }
  0xe0   : > { %v330_v17 = vpop.f32.mrf.mxu0  ;;  %v345_v18 = vpop.f32.mrf.mxu3 }
  0xe1   : > { %380 = vxpose.xlu1.b32.start [1/2] (short) (narrow) %v330_v17, 8  ;;  %412 = vxpose.xlu0.b32.start [1/2] (short) (narrow) %v336_v16, 8  ;;  %v779_v16 = vstv %s1471_s13  ;;  %v799_v17 = vstv %s1477_s15  ;;  %p1152_p13 = pneg %p1151_p6 }
  0xe2   : > { %445 = vxpose.xlu2.b32.end [2/2] (short) (narrow) %v345_v18, 8 }
  0xe3   : > { %p1157_p8 = pnand %p1156_p5, %p1152_p13 }
  0xe6   : > { %v339_v19 = vpop.f32.mrf.mxu2 }
  0xe9   : > { %381 = vxpose.xlu1.b32.end [2/2] (short) (narrow) %v333_v13, 8  ;;  %413 = vxpose.xlu0.b32.end [2/2] (short) (narrow) %v339_v19, 8  ;;  %v723_v13 = vstv %s1453_s18  ;;  %s1501_s18 = sld [smem:[#allocation6 + $0x7]] }
 0x173   : > { %v460_v20 = vpop.trf.xlu2 }
 0x174   : > { %942 = vmatmul.msk.f32.vlgmr.msrb.gmra.mxu3 %vm282_vm0, %v460_v20 }
 0x175   : > { %v364_v21 = vpop.trf.xlu0 }
 0x176   : > { %939 = vmatmul.msk.f32.vlgmr.msra.gmra.mxu1 %vm282_vm0, %v364_v21 }
 0x185   : > { %v396_v22 = vpop.trf.xlu1  ;;  %v428_v23 = vpop.trf.xlu0 }
 0x186   : > { %940 = vmatmul.msk.f32.gmra.mxu1 %vm282_vm0, %v396_v22 }
 0x18e   : > { %941 = vmatmul.msk.f32.gmra.mxu1 %vm282_vm0, %v428_v23 }
 0x1f3   : > { %v507_v24 = vpop.f32.mrf.mxu1 }
 0x1f4   : > { %519 = vxpose.xlu1.b32.start.end [1/1] (short) (narrow) %v507_v24, 8 }
 0x1f7   : > { %v516_v26 = vpop.f32.mrf.mxu3 }
 0x203   : > { %v510_v25 = vpop.f32.mrf.mxu1 }
 0x204   : > { %551 = vxpose.xlu2.b32.start.end [1/1] (short) (narrow) %v510_v25, 8 }
 0x20b   : > { %v513_v27 = vpop.f32.mrf.mxu1 }
 0x20c   : > { %583 = vxpose.xlu1.b32.start.end [1/1] (short) (narrow) %v513_v27, 8  ;;  %615 = vxpose.xlu2.b32.start.end [1/1] (short) (narrow) %v516_v26, 8 }
 0x298   : > { %v535_v45 = vpop.trf.xlu1 }
 0x299   : > { %v649_v58 = vmul.f32 %v648_v36, %v535_v45  ;;  %v669_v59 = vmul.f32 %v668_v37, %v535_v45  ;;  %v689_v60 = vmul.f32 %v688_v38, %v535_v45  ;;  %v709_v61 = vmul.f32 %v708_v39, %v535_v45 }
 0x29a   : > { %v729_v62 = vmul.f32 %v728_v40, %v535_v45  ;;  %v749_v63 = vmul.f32 %v748_v41, %v535_v45  ;;  %v769_v0 = vmul.f32 %v768_v42, %v535_v45  ;;  %v789_v1 = vmul.f32 %v788_v43, %v535_v45 }
 0x29d   : > { %v567_v44 = vpop.trf.xlu2 }
 0x29e   : > { %v652_v2 = vmul.f32 %v651_v28, %v567_v44  ;;  %v672_v3 = vmul.f32 %v671_v29, %v567_v44  ;;  %v692_v4 = vmul.f32 %v691_v30, %v567_v44  ;;  %v712_v5 = vmul.f32 %v711_v31, %v567_v44 }
 0x29f   : > { %v732_v6 = vmul.f32 %v731_v32, %v567_v44  ;;  %v752_v7 = vmul.f32 %v751_v33, %v567_v44  ;;  %v772_v8 = vmul.f32 %v771_v34, %v567_v44  ;;  %v792_v9 = vmul.f32 %v791_v35, %v567_v44 }
 0x2a0   : > { %v653_v19 = vadd.f32 %v652_v2, %v649_v58  ;;  %v673_v20 = vadd.f32 %v672_v3, %v669_v59  ;;  %v693_v21 = vadd.f32 %v692_v4, %v689_v60  ;;  %v713_v22 = vadd.f32 %v712_v5, %v709_v61 }
 0x2a1   : > { %v733_v23 = vadd.f32 %v732_v6, %v729_v62  ;;  %v753_v24 = vadd.f32 %v752_v7, %v749_v63  ;;  %v773_v25 = vadd.f32 %v772_v8, %v769_v0  ;;  %v793_v26 = vadd.f32 %v792_v9, %v789_v1 }
 0x2a2   : > { %v783_v0 = vstv %s1499_s4  ;;  %v803_v3 = vstv %s1501_s18 }
 0x2a5   : > { %v631_v18 = vpop.trf.xlu2 }
 0x2a6   : > { %v660_v27 = vmul.f32 %v659_v54, %v631_v18  ;;  %v680_v28 = vmul.f32 %v679_v55, %v631_v18  ;;  %v700_v29 = vmul.f32 %v699_v56, %v631_v18  ;;  %v720_v30 = vmul.f32 %v719_v57, %v631_v18 }
 0x2a7   : > { %v740_v32 = vmul.f32 %v739_v14, %v631_v18  ;;  %v760_v33 = vmul.f32 %v759_v15, %v631_v18  ;;  %v780_v34 = vmul.f32 %v779_v16, %v631_v18  ;;  %v800_v35 = vmul.f32 %v799_v17, %v631_v18 }
 0x2b0   : > { %v599_v31 = vpop.trf.xlu1 }
 0x2b1   : > { %v656_v36 = vmul.f32 %v655_v46, %v599_v31  ;;  %v676_v37 = vmul.f32 %v675_v47, %v599_v31  ;;  %v696_v38 = vmul.f32 %v695_v48, %v599_v31  ;;  %v716_v39 = vmul.f32 %v715_v49, %v599_v31 }
 0x2b2   : > { %v736_v40 = vmul.f32 %v735_v50, %v599_v31  ;;  %v756_v41 = vmul.f32 %v755_v51, %v599_v31  ;;  %v776_v42 = vmul.f32 %v775_v52, %v599_v31  ;;  %v796_v43 = vmul.f32 %v795_v53, %v599_v31 }
 0x2b3   : > { %v657_v44 = vadd.f32 %v656_v36, %v653_v19  ;;  %v677_v45 = vadd.f32 %v676_v37, %v673_v20  ;;  %v697_v54 = vadd.f32 %v696_v38, %v693_v21  ;;  %v717_v55 = vadd.f32 %v716_v39, %v713_v22 }
 0x2b4   : > { %v737_v56 = vadd.f32 %v736_v40, %v733_v23  ;;  %v757_v57 = vadd.f32 %v756_v41, %v753_v24  ;;  %v777_v58 = vadd.f32 %v776_v42, %v773_v25  ;;  %v797_v46 = vadd.f32 %v796_v43, %v793_v26 }
 0x2b5   : > { %v661_v47 = vadd.f32 %v660_v27, %v657_v44  ;;  %v681_v48 = vadd.f32 %v680_v28, %v677_v45  ;;  %v701_v49 = vadd.f32 %v700_v29, %v697_v54  ;;  %v721_v50 = vadd.f32 %v720_v30, %v717_v55 }
 0x2b6   : > { %v743_v51 = vstv %s1495_s2  ;;  %v763_v52 = vstv %s1497_s3  ;;  %v741_v59 = vadd.f32 %v740_v32, %v737_v56  ;;  %v761_v53 = vadd.f32 %v760_v33, %v757_v57 }
 0x2b7   : > { %v664_v60 = vadd.f32 %v663_v10, %v661_v47  ;;  %v684_v61 = vadd.f32 %v683_v11, %v681_v48  ;;  %v704_v62 = vadd.f32 %v703_v12, %v701_v49  ;;  %v781_v63 = vadd.f32 %v780_v34, %v777_v58 }
 0x2b8   : > { %v724_v1 = vadd.f32 %v723_v13, %v721_v50  ;;  %v801_v2 = vadd.f32 %v800_v35, %v797_v46  ;;  %v744_v4 = vadd.f32 %v743_v51, %v741_v59  ;;  %v764_v5 = vadd.f32 %v763_v52, %v761_v53 }
 0x2b9   : > { %666 = vst.msk [vmem:[%s271_s1] sm:$0xff] %vm665_vm1, %v664_v60  ;;  %v784_v6 = vadd.f32 %v783_v0, %v781_v63 }
 0x2ba   : > { %951 = vst.msk [vmem:[%s271_s1 + $0x8] sm:$0xff] %vm665_vm1, %v684_v61  ;;  %v804_v7 = vadd.f32 %v803_v3, %v801_v2 }
 0x2bb   : > { %957 = vst.msk [vmem:[%s271_s1 + $0x10] sm:$0xff] %vm665_vm1, %v704_v62 }
 0x2bc   : > { %963 = vst.msk [vmem:[%s271_s1 + $0x18] sm:$0xff] %vm665_vm1, %v724_v1 }
 0x2bd   : > { %969 = vst.msk [vmem:[%s271_s1 + $0x20] sm:$0xff] %vm665_vm1, %v744_v4 }
 0x2be   : > { %975 = vst.msk [vmem:[%s271_s1 + $0x28] sm:$0xff] %vm665_vm1, %v764_v5 }
 0x2bf   : > { %981 = vst.msk [vmem:[%s271_s1 + $0x30] sm:$0xff] %vm665_vm1, %v784_v6 }
 0x2c0   : > { %987 = vst.msk [vmem:[%s271_s1 + $0x38] sm:$0xff] %vm665_vm1, %v804_v7 }
 0x2c1   : > { %1160 = shalt.err (!%p1157_p8)
}
 0x2c2   : > { %s1213_s12 = smov 128   ;;  %s1214_s28 = smov 8  }
 0x2c3   : > { %1011 = dma.vmem_to_hbm [thread:$0]  (%p1297_p11), %s821_s0, 1024, %s823_s16, %s808_s27, %s1213_s12, %s1213_s12, %s1214_s28  }
 0x2c4 PF: > { %s1606_s10 = sld [smem:[#allocation14_spill]] }
 0x2c5   : > { %s1608_s15 = sld [smem:[#allocation17_spill]] }
 0x2ca   : > { %s837_s17 = sand.u32 1, %s1606_s10  }
 0x2cb   : > { %p1609_p9 = scmp.ge.s32.totalorder %s1608_s15, 2  ;;  %s838_s25 = scalar_lea.sflag [#allocation4], %s837_s17 }
 0x2cd   : > { %p1025_p10 = pnand %p1609_p9, %p1301_p12 }
 0x2cf   : > { %p1026_p1 = pneg %p1025_p10 }
 0x2d1   : > { %1190 = dma.done.wait (%p1026_p1), %s838_s25, 1024  }
 0x2d2   : > { %1192 = vsyncadd (%p1026_p1), %s838_s25, 4294966272  ;;  %s1610_s21 = sld [smem:[#allocation19_spill]] }
 0x2d3   : > { %s1611_s18 = sld [smem:[#allocation15_spill]] }
 0x2d4   : > { %s1612_s19 = sld [smem:[#allocation16_spill]] }
 0x2d5   : > { %s1613_s20 = sld [smem:[#allocation20_spill]] }
 0x2d8   : > { %p20_p2 = scmp.ge.s32.totalorder %s1610_s21, 4  }
 0x2da   :  { %22 = sbr.rel (!%p20_p2) target bundleno = 14 (0xe), region = 101 }
 0x2df   :  { %844 = vsyncpa [#allocation3], 1 }
 0x2e0   :  { %846 = vsyncpa [#allocation3 + $0x1], 1 }
 0x2e1   :  { %847 = vsyncpa [#allocation4], 1 }
 0x2e2   :  { %849 = vsyncpa [#allocation4 + $0x1], 1 }
 0x2e3   :  { %850 = vsyncpa [#allocation5], 1 }
 0x2e4   :  { %852 = vsyncpa [#allocation5 + $0x1], 1 }
 0x2e5   :  { %853 = vsyncpa [#allocation7], 1 }

</bundles_post_ra>
